<compile_context>
chip_gen: v7x
topology: tpu7x:2x2x1
jax: 0.10.0
libtpu: 0.0.40
codegen_flags: <defaults>
</compile_context>

<pallas_src>
import functools

import jax
import jax.numpy as jnp
from jax.experimental import pallas as pl
from jax.experimental.pallas import tpu as pltpu


def _fused_chebnet_kernel(*refs, K, num_layers):
    """One batch element: all ChebNet layers, activations resident in VMEM.

    refs = (lap_ref, x_ref, w0_ref, b0_ref, ..., w{L-1}_ref, b{L-1}_ref, o_ref)
      lap_ref: (1, N, N)   bf16
      x_ref  : (1, N, F0)  f32
      w_ref  : (K, Fi, Fo) bf16   (per layer)
      b_ref  : (1, Fo)     f32    (per layer)
      o_ref  : (1, N, C)   f32
    """
    lap_ref, x_ref = refs[0], refs[1]
    o_ref = refs[-1]
    wb = refs[2:-1]

    lap = lap_ref[0]                          # (N, N) bf16
    h = x_ref[0].astype(jnp.float32)          # (N, F_in) f32 activation carry

    for li in range(num_layers):
        w_ref = wb[2 * li]                    # (K, Fi, Fo) bf16
        b_ref = wb[2 * li + 1]                # (1, Fo)     f32

        # Chebyshev recursion with per-order accumulated matmuls (no concat).
        t0 = h                                # T0, f32
        y = jnp.dot(t0.astype(jnp.bfloat16), w_ref[0],
                    preferred_element_type=jnp.float32)        # (N, Fo) f32
        if K > 1:
            t1 = jnp.dot(lap, t0.astype(jnp.bfloat16),
                         preferred_element_type=jnp.float32)   # T1, f32
            y += jnp.dot(t1.astype(jnp.bfloat16), w_ref[1],
                         preferred_element_type=jnp.float32)
            for kk in range(2, K):
                t2 = 2.0 * jnp.dot(lap, t1.astype(jnp.bfloat16),
                                   preferred_element_type=jnp.float32) - t0
                y += jnp.dot(t2.astype(jnp.bfloat16), w_ref[kk],
                             preferred_element_type=jnp.float32)
                t0, t1 = t1, t2

        y = y + b_ref[...]                    # bias broadcast over rows
        if li < num_layers - 1:               # ReLU on all but the output conv
            y = jnp.maximum(y, 0.0)
        h = y

    o_ref[0] = h.astype(o_ref.dtype)


def chebnet_gcn_forward(x, A, params):
    """Fused ChebNetGCN forward.  x: (B, N, F_in), A: (B, N, N) dense laplacian."""
    k = int(params["k"])
    layer_params = [params["input"]] + list(params["hidden"]) + [params["output"]]
    num_layers = len(layer_params)

    B, N, F_in = x.shape
    out_channels = layer_params[-1][0].shape[-1]

    # bf16 operands in HBM (halves DMA of the dominant (B,N,N) laplacian),
    # f32 accumulation inside the kernel.
    lap = A.astype(jnp.bfloat16)
    x = x.astype(jnp.float32)

    flat_wb = []
    in_specs = [
        pl.BlockSpec((1, N, N), lambda b: (b, 0, 0)),        # laplacian
        pl.BlockSpec((1, N, F_in), lambda b: (b, 0, 0)),     # x
    ]
    for (w, b) in layer_params:
        KF, Fo = w.shape
        Fi = KF // k
        w3 = w.reshape(k, Fi, Fo).astype(jnp.bfloat16)       # (K, Fi, Fo)
        b2 = b.astype(jnp.float32)                           # (1, Fo)
        flat_wb += [w3, b2]
        in_specs += [
            pl.BlockSpec((k, Fi, Fo), lambda bb: (0, 0, 0)),
            pl.BlockSpec((1, Fo), lambda bb: (0, 0)),
        ]

    kernel = functools.partial(_fused_chebnet_kernel, K=k, num_layers=num_layers)

    out = pl.pallas_call(
        kernel,
        out_shape=jax.ShapeDtypeStruct((B, N, out_channels), jnp.float32),
        grid_spec=pltpu.PrefetchScalarGridSpec(
            num_scalar_prefetch=0,
            grid=(B,),
            in_specs=in_specs,
            out_specs=pl.BlockSpec((1, N, out_channels), lambda b: (b, 0, 0)),
        ),
        compiler_params=pltpu.CompilerParams(
            dimension_semantics=("parallel",)),     # v7x: 2 TCs split the batch
    )(lap, x, *flat_wb)

    # matches torch `x.squeeze()`
    return jnp.squeeze(out)


def init_linear(key, in_features, out_features):
    """Deterministic init mimicking nn.Linear (uniform +/- 1/sqrt(fan_in))."""
    kw, kb = jax.random.split(key)
    bound = 1.0 / jnp.sqrt(jnp.float32(in_features))
    # stored transposed: (in_features, out_features) == W^T, rows ordered k*F+f
    w = jax.random.uniform(kw, (in_features, out_features), jnp.float32,
                           minval=-bound, maxval=bound)
    b = jax.random.uniform(kb, (1, out_features), jnp.float32,
                           minval=-bound, maxval=bound)
    return w, b


def init_chebnet_gcn(key, input_size, hidden_size, out_channels,
                     num_hidden_layers=2, k=3):
    keys = jax.random.split(key, num_hidden_layers + 2)
    params = {
        "input": init_linear(keys[0], input_size * k, hidden_size),
        "hidden": [init_linear(keys[1 + i], hidden_size * k, hidden_size)
                   for i in range(num_hidden_layers)],
        "output": init_linear(keys[-1], hidden_size * k, out_channels),
        "k": k,
    }
    return params


if __name__ == "__main__":
    # Small, deterministic shapes consistent with the module:
    #   batch B=2, num_electrodes N=16, input_size=8, hidden=32, out_channels=4
    B, N = 2, 16
    input_size, hidden_size, out_channels = 8, 32, 4
    k = 3

    key = jax.random.PRNGKey(0)
    kx, kA, kp = jax.random.split(key, 3)

    x = jax.random.normal(kx, (B, N, input_size), jnp.float32)

    # synthetic (dense) normalized-laplacian-like matrix per batch element
    A = jax.random.normal(kA, (B, N, N), jnp.float32) * 0.1
    A = 0.5 * (A + jnp.swapaxes(A, 1, 2))     # symmetric, small-magnitude

    params = init_chebnet_gcn(kp, input_size, hidden_size, out_channels,
                              num_hidden_layers=2, k=k)

    out = chebnet_gcn_forward(x, A, params)
    jax.block_until_ready(out)
    assert out.shape == (B, N, out_channels)
    print("KERNEL_OK")
</pallas_src>

<mosaic_0001>
module attributes {stable_mosaic.version = 11 : i64} {
  func.func @_fused_chebnet_kernel(%arg0: i32, %arg1: memref<1x16x16xbf16, #tpu.memory_space<vmem>>, %arg2: memref<1x16x8xf32, #tpu.memory_space<vmem>>, %arg3: memref<3x8x32xbf16, #tpu.memory_space<vmem>>, %arg4: memref<1x32xf32, #tpu.memory_space<vmem>>, %arg5: memref<3x32x32xbf16, #tpu.memory_space<vmem>>, %arg6: memref<1x32xf32, #tpu.memory_space<vmem>>, %arg7: memref<3x32x32xbf16, #tpu.memory_space<vmem>>, %arg8: memref<1x32xf32, #tpu.memory_space<vmem>>, %arg9: memref<3x32x4xbf16, #tpu.memory_space<vmem>>, %arg10: memref<1x4xf32, #tpu.memory_space<vmem>>, %arg11: memref<1x16x4xf32, #tpu.memory_space<vmem>>) attributes {dimension_semantics = [#tpu.dimension_semantics<parallel>], iteration_bounds = array<i64: 2>, scalar_prefetch = 0 : i64, scratch_operands = 0 : i64, tpu.core_type = #tpu.core_type<tc>, window_params = [{transform_indices = @transform_0, window_bounds = array<i64: 1, 16, 16>}, {transform_indices = @transform_1, window_bounds = array<i64: 1, 16, 8>}, {pipeline_mode = #tpu.pipeline_mode<synchronous>, transform_indices = @transform_2, window_bounds = array<i64: 3, 8, 32>}, {pipeline_mode = #tpu.pipeline_mode<synchronous>, transform_indices = @transform_3, window_bounds = array<i64: 1, 32>}, {pipeline_mode = #tpu.pipeline_mode<synchronous>, transform_indices = @transform_4, window_bounds = array<i64: 3, 32, 32>}, {pipeline_mode = #tpu.pipeline_mode<synchronous>, transform_indices = @transform_5, window_bounds = array<i64: 1, 32>}, {pipeline_mode = #tpu.pipeline_mode<synchronous>, transform_indices = @transform_6, window_bounds = array<i64: 3, 32, 32>}, {pipeline_mode = #tpu.pipeline_mode<synchronous>, transform_indices = @transform_7, window_bounds = array<i64: 1, 32>}, {pipeline_mode = #tpu.pipeline_mode<synchronous>, transform_indices = @transform_8, window_bounds = array<i64: 3, 32, 4>}, {pipeline_mode = #tpu.pipeline_mode<synchronous>, transform_indices = @transform_9, window_bounds = array<i64: 1, 4>}, {transform_indices = @transform_10, window_bounds = array<i64: 1, 16, 4>}]} {
    %c0 = arith.constant 0 : index
    %c0_0 = arith.constant 0 : index
    %c0_1 = arith.constant 0 : index
    %0 = vector.load %arg1[%c0, %c0_0, %c0_1] : memref<1x16x16xbf16, #tpu.memory_space<vmem>>, vector<1x16x16xbf16>
    %1 = vector.shape_cast %0 : vector<1x16x16xbf16> to vector<16x16xbf16>
    %c0_2 = arith.constant 0 : index
    %c0_3 = arith.constant 0 : index
    %c0_4 = arith.constant 0 : index
    %2 = vector.load %arg2[%c0_2, %c0_3, %c0_4] : memref<1x16x8xf32, #tpu.memory_space<vmem>>, vector<1x16x8xf32>
    %3 = vector.shape_cast %2 : vector<1x16x8xf32> to vector<16x8xf32>
    %4 = arith.truncf %3 : vector<16x8xf32> to vector<16x8xbf16>
    %c0_5 = arith.constant 0 : index
    %c0_6 = arith.constant 0 : index
    %c0_7 = arith.constant 0 : index
    %5 = vector.load %arg3[%c0_5, %c0_6, %c0_7] : memref<3x8x32xbf16, #tpu.memory_space<vmem>>, vector<1x8x32xbf16>
    %6 = vector.shape_cast %5 : vector<1x8x32xbf16> to vector<8x32xbf16>
    %cst = arith.constant dense<0.000000e+00> : vector<16x32xf32>
    %7 = tpu.matmul %4, %6, %cst {dimension_numbers = #tpu.dot_dimension_numbers<[1], [0], [0], [1], [0, 0, 1, 1], [], []>} : vector<16x8xbf16>, vector<8x32xbf16>, vector<16x32xf32> -> vector<16x32xf32>
    %8 = arith.truncf %3 : vector<16x8xf32> to vector<16x8xbf16>
    %cst_8 = arith.constant dense<0.000000e+00> : vector<16x8xf32>
    %9 = tpu.matmul %1, %8, %cst_8 {dimension_numbers = #tpu.dot_dimension_numbers<[1], [0], [0], [1], [0, 0, 1, 1], [], []>} : vector<16x16xbf16>, vector<16x8xbf16>, vector<16x8xf32> -> vector<16x8xf32>
    %10 = arith.truncf %9 : vector<16x8xf32> to vector<16x8xbf16>
    %c1 = arith.constant 1 : index
    %c0_9 = arith.constant 0 : index
    %c0_10 = arith.constant 0 : index
    %11 = vector.load %arg3[%c1, %c0_9, %c0_10] : memref<3x8x32xbf16, #tpu.memory_space<vmem>>, vector<1x8x32xbf16>
    %12 = vector.shape_cast %11 : vector<1x8x32xbf16> to vector<8x32xbf16>
    %cst_11 = arith.constant dense<0.000000e+00> : vector<16x32xf32>
    %13 = tpu.matmul %10, %12, %cst_11 {dimension_numbers = #tpu.dot_dimension_numbers<[1], [0], [0], [1], [0, 0, 1, 1], [], []>} : vector<16x8xbf16>, vector<8x32xbf16>, vector<16x32xf32> -> vector<16x32xf32>
    %14 = arith.addf %7, %13 : vector<16x32xf32>
    %15 = arith.truncf %9 : vector<16x8xf32> to vector<16x8xbf16>
    %cst_12 = arith.constant dense<0.000000e+00> : vector<16x8xf32>
    %16 = tpu.matmul %1, %15, %cst_12 {dimension_numbers = #tpu.dot_dimension_numbers<[1], [0], [0], [1], [0, 0, 1, 1], [], []>} : vector<16x16xbf16>, vector<16x8xbf16>, vector<16x8xf32> -> vector<16x8xf32>
    %cst_13 = arith.constant 2.000000e+00 : f32
    %17 = vector.broadcast %cst_13 : f32 to vector<16x8xf32>
    %18 = arith.mulf %17, %16 : vector<16x8xf32>
    %19 = arith.subf %18, %3 : vector<16x8xf32>
    %20 = arith.truncf %19 : vector<16x8xf32> to vector<16x8xbf16>
    %c2 = arith.constant 2 : index
    %c0_14 = arith.constant 0 : index
    %c0_15 = arith.constant 0 : index
    %21 = vector.load %arg3[%c2, %c0_14, %c0_15] : memref<3x8x32xbf16, #tpu.memory_space<vmem>>, vector<1x8x32xbf16>
    %22 = vector.shape_cast %21 : vector<1x8x32xbf16> to vector<8x32xbf16>
    %cst_16 = arith.constant dense<0.000000e+00> : vector<16x32xf32>
    %23 = tpu.matmul %20, %22, %cst_16 {dimension_numbers = #tpu.dot_dimension_numbers<[1], [0], [0], [1], [0, 0, 1, 1], [], []>} : vector<16x8xbf16>, vector<8x32xbf16>, vector<16x32xf32> -> vector<16x32xf32>
    %24 = arith.addf %14, %23 : vector<16x32xf32>
    %c0_17 = arith.constant 0 : index
    %c0_18 = arith.constant 0 : index
    %25 = vector.load %arg4[%c0_17, %c0_18] : memref<1x32xf32, #tpu.memory_space<vmem>>, vector<1x32xf32>
    %26 = vector.broadcast %25 : vector<1x32xf32> to vector<16x32xf32>
    %27 = arith.addf %24, %26 : vector<16x32xf32>
    %cst_19 = arith.constant 0.000000e+00 : f32
    %28 = vector.broadcast %cst_19 : f32 to vector<16x32xf32>
    %29 = arith.maximumf %27, %28 : vector<16x32xf32>
    %30 = arith.truncf %29 : vector<16x32xf32> to vector<16x32xbf16>
    %c0_20 = arith.constant 0 : index
    %c0_21 = arith.constant 0 : index
    %c0_22 = arith.constant 0 : index
    %31 = vector.load %arg5[%c0_20, %c0_21, %c0_22] : memref<3x32x32xbf16, #tpu.memory_space<vmem>>, vector<1x32x32xbf16>
    %32 = vector.shape_cast %31 : vector<1x32x32xbf16> to vector<32x32xbf16>
    %cst_23 = arith.constant dense<0.000000e+00> : vector<16x32xf32>
    %33 = tpu.matmul %30, %32, %cst_23 {dimension_numbers = #tpu.dot_dimension_numbers<[1], [0], [0], [1], [0, 0, 1, 1], [], []>} : vector<16x32xbf16>, vector<32x32xbf16>, vector<16x32xf32> -> vector<16x32xf32>
    %34 = arith.truncf %29 : vector<16x32xf32> to vector<16x32xbf16>
    %cst_24 = arith.constant dense<0.000000e+00> : vector<16x32xf32>
    %35 = tpu.matmul %1, %34, %cst_24 {dimension_numbers = #tpu.dot_dimension_numbers<[1], [0], [0], [1], [0, 0, 1, 1], [], []>} : vector<16x16xbf16>, vector<16x32xbf16>, vector<16x32xf32> -> vector<16x32xf32>
    %36 = arith.truncf %35 : vector<16x32xf32> to vector<16x32xbf16>
    %c1_25 = arith.constant 1 : index
    %c0_26 = arith.constant 0 : index
    %c0_27 = arith.constant 0 : index
    %37 = vector.load %arg5[%c1_25, %c0_26, %c0_27] : memref<3x32x32xbf16, #tpu.memory_space<vmem>>, vector<1x32x32xbf16>
    %38 = vector.shape_cast %37 : vector<1x32x32xbf16> to vector<32x32xbf16>
    %cst_28 = arith.constant dense<0.000000e+00> : vector<16x32xf32>
    %39 = tpu.matmul %36, %38, %cst_28 {dimension_numbers = #tpu.dot_dimension_numbers<[1], [0], [0], [1], [0, 0, 1, 1], [], []>} : vector<16x32xbf16>, vector<32x32xbf16>, vector<16x32xf32> -> vector<16x32xf32>
    %40 = arith.addf %33, %39 : vector<16x32xf32>
    %41 = arith.truncf %35 : vector<16x32xf32> to vector<16x32xbf16>
    %cst_29 = arith.constant dense<0.000000e+00> : vector<16x32xf32>
    %42 = tpu.matmul %1, %41, %cst_29 {dimension_numbers = #tpu.dot_dimension_numbers<[1], [0], [0], [1], [0, 0, 1, 1], [], []>} : vector<16x16xbf16>, vector<16x32xbf16>, vector<16x32xf32> -> vector<16x32xf32>
    %cst_30 = arith.constant 2.000000e+00 : f32
    %43 = vector.broadcast %cst_30 : f32 to vector<16x32xf32>
    %44 = arith.mulf %43, %42 : vector<16x32xf32>
    %45 = arith.subf %44, %29 : vector<16x32xf32>
    %46 = arith.truncf %45 : vector<16x32xf32> to vector<16x32xbf16>
    %c2_31 = arith.constant 2 : index
    %c0_32 = arith.constant 0 : index
    %c0_33 = arith.constant 0 : index
    %47 = vector.load %arg5[%c2_31, %c0_32, %c0_33] : memref<3x32x32xbf16, #tpu.memory_space<vmem>>, vector<1x32x32xbf16>
    %48 = vector.shape_cast %47 : vector<1x32x32xbf16> to vector<32x32xbf16>
    %cst_34 = arith.constant dense<0.000000e+00> : vector<16x32xf32>
    %49 = tpu.matmul %46, %48, %cst_34 {dimension_numbers = #tpu.dot_dimension_numbers<[1], [0], [0], [1], [0, 0, 1, 1], [], []>} : vector<16x32xbf16>, vector<32x32xbf16>, vector<16x32xf32> -> vector<16x32xf32>
    %50 = arith.addf %40, %49 : vector<16x32xf32>
    %c0_35 = arith.constant 0 : index
    %c0_36 = arith.constant 0 : index
    %51 = vector.load %arg6[%c0_35, %c0_36] : memref<1x32xf32, #tpu.memory_space<vmem>>, vector<1x32xf32>
    %52 = vector.broadcast %51 : vector<1x32xf32> to vector<16x32xf32>
    %53 = arith.addf %50, %52 : vector<16x32xf32>
    %cst_37 = arith.constant 0.000000e+00 : f32
    %54 = vector.broadcast %cst_37 : f32 to vector<16x32xf32>
    %55 = arith.maximumf %53, %54 : vector<16x32xf32>
    %56 = arith.truncf %55 : vector<16x32xf32> to vector<16x32xbf16>
    %c0_38 = arith.constant 0 : index
    %c0_39 = arith.constant 0 : index
    %c0_40 = arith.constant 0 : index
    %57 = vector.load %arg7[%c0_38, %c0_39, %c0_40] : memref<3x32x32xbf16, #tpu.memory_space<vmem>>, vector<1x32x32xbf16>
    %58 = vector.shape_cast %57 : vector<1x32x32xbf16> to vector<32x32xbf16>
    %cst_41 = arith.constant dense<0.000000e+00> : vector<16x32xf32>
    %59 = tpu.matmul %56, %58, %cst_41 {dimension_numbers = #tpu.dot_dimension_numbers<[1], [0], [0], [1], [0, 0, 1, 1], [], []>} : vector<16x32xbf16>, vector<32x32xbf16>, vector<16x32xf32> -> vector<16x32xf32>
    %60 = arith.truncf %55 : vector<16x32xf32> to vector<16x32xbf16>
    %cst_42 = arith.constant dense<0.000000e+00> : vector<16x32xf32>
    %61 = tpu.matmul %1, %60, %cst_42 {dimension_numbers = #tpu.dot_dimension_numbers<[1], [0], [0], [1], [0, 0, 1, 1], [], []>} : vector<16x16xbf16>, vector<16x32xbf16>, vector<16x32xf32> -> vector<16x32xf32>
    %62 = arith.truncf %61 : vector<16x32xf32> to vector<16x32xbf16>
    %c1_43 = arith.constant 1 : index
    %c0_44 = arith.constant 0 : index
    %c0_45 = arith.constant 0 : index
    %63 = vector.load %arg7[%c1_43, %c0_44, %c0_45] : memref<3x32x32xbf16, #tpu.memory_space<vmem>>, vector<1x32x32xbf16>
    %64 = vector.shape_cast %63 : vector<1x32x32xbf16> to vector<32x32xbf16>
    %cst_46 = arith.constant dense<0.000000e+00> : vector<16x32xf32>
    %65 = tpu.matmul %62, %64, %cst_46 {dimension_numbers = #tpu.dot_dimension_numbers<[1], [0], [0], [1], [0, 0, 1, 1], [], []>} : vector<16x32xbf16>, vector<32x32xbf16>, vector<16x32xf32> -> vector<16x32xf32>
    %66 = arith.addf %59, %65 : vector<16x32xf32>
    %67 = arith.truncf %61 : vector<16x32xf32> to vector<16x32xbf16>
    %cst_47 = arith.constant dense<0.000000e+00> : vector<16x32xf32>
    %68 = tpu.matmul %1, %67, %cst_47 {dimension_numbers = #tpu.dot_dimension_numbers<[1], [0], [0], [1], [0, 0, 1, 1], [], []>} : vector<16x16xbf16>, vector<16x32xbf16>, vector<16x32xf32> -> vector<16x32xf32>
    %cst_48 = arith.constant 2.000000e+00 : f32
    %69 = vector.broadcast %cst_48 : f32 to vector<16x32xf32>
    %70 = arith.mulf %69, %68 : vector<16x32xf32>
    %71 = arith.subf %70, %55 : vector<16x32xf32>
    %72 = arith.truncf %71 : vector<16x32xf32> to vector<16x32xbf16>
    %c2_49 = arith.constant 2 : index
    %c0_50 = arith.constant 0 : index
    %c0_51 = arith.constant 0 : index
    %73 = vector.load %arg7[%c2_49, %c0_50, %c0_51] : memref<3x32x32xbf16, #tpu.memory_space<vmem>>, vector<1x32x32xbf16>
    %74 = vector.shape_cast %73 : vector<1x32x32xbf16> to vector<32x32xbf16>
    %cst_52 = arith.constant dense<0.000000e+00> : vector<16x32xf32>
    %75 = tpu.matmul %72, %74, %cst_52 {dimension_numbers = #tpu.dot_dimension_numbers<[1], [0], [0], [1], [0, 0, 1, 1], [], []>} : vector<16x32xbf16>, vector<32x32xbf16>, vector<16x32xf32> -> vector<16x32xf32>
    %76 = arith.addf %66, %75 : vector<16x32xf32>
    %c0_53 = arith.constant 0 : index
    %c0_54 = arith.constant 0 : index
    %77 = vector.load %arg8[%c0_53, %c0_54] : memref<1x32xf32, #tpu.memory_space<vmem>>, vector<1x32xf32>
    %78 = vector.broadcast %77 : vector<1x32xf32> to vector<16x32xf32>
    %79 = arith.addf %76, %78 : vector<16x32xf32>
    %cst_55 = arith.constant 0.000000e+00 : f32
    %80 = vector.broadcast %cst_55 : f32 to vector<16x32xf32>
    %81 = arith.maximumf %79, %80 : vector<16x32xf32>
    %82 = arith.truncf %81 : vector<16x32xf32> to vector<16x32xbf16>
    %c0_56 = arith.constant 0 : index
    %c0_57 = arith.constant 0 : index
    %c0_58 = arith.constant 0 : index
    %83 = vector.load %arg9[%c0_56, %c0_57, %c0_58] : memref<3x32x4xbf16, #tpu.memory_space<vmem>>, vector<1x32x4xbf16>
    %84 = vector.shape_cast %83 : vector<1x32x4xbf16> to vector<32x4xbf16>
    %cst_59 = arith.constant dense<0.000000e+00> : vector<16x4xf32>
    %85 = tpu.matmul %82, %84, %cst_59 {dimension_numbers = #tpu.dot_dimension_numbers<[1], [0], [0], [1], [0, 0, 1, 1], [], []>} : vector<16x32xbf16>, vector<32x4xbf16>, vector<16x4xf32> -> vector<16x4xf32>
    %86 = arith.truncf %81 : vector<16x32xf32> to vector<16x32xbf16>
    %cst_60 = arith.constant dense<0.000000e+00> : vector<16x32xf32>
    %87 = tpu.matmul %1, %86, %cst_60 {dimension_numbers = #tpu.dot_dimension_numbers<[1], [0], [0], [1], [0, 0, 1, 1], [], []>} : vector<16x16xbf16>, vector<16x32xbf16>, vector<16x32xf32> -> vector<16x32xf32>
    %88 = arith.truncf %87 : vector<16x32xf32> to vector<16x32xbf16>
    %c1_61 = arith.constant 1 : index
    %c0_62 = arith.constant 0 : index
    %c0_63 = arith.constant 0 : index
    %89 = vector.load %arg9[%c1_61, %c0_62, %c0_63] : memref<3x32x4xbf16, #tpu.memory_space<vmem>>, vector<1x32x4xbf16>
    %90 = vector.shape_cast %89 : vector<1x32x4xbf16> to vector<32x4xbf16>
    %cst_64 = arith.constant dense<0.000000e+00> : vector<16x4xf32>
    %91 = tpu.matmul %88, %90, %cst_64 {dimension_numbers = #tpu.dot_dimension_numbers<[1], [0], [0], [1], [0, 0, 1, 1], [], []>} : vector<16x32xbf16>, vector<32x4xbf16>, vector<16x4xf32> -> vector<16x4xf32>
    %92 = arith.addf %85, %91 : vector<16x4xf32>
    %93 = arith.truncf %87 : vector<16x32xf32> to vector<16x32xbf16>
    %cst_65 = arith.constant dense<0.000000e+00> : vector<16x32xf32>
    %94 = tpu.matmul %1, %93, %cst_65 {dimension_numbers = #tpu.dot_dimension_numbers<[1], [0], [0], [1], [0, 0, 1, 1], [], []>} : vector<16x16xbf16>, vector<16x32xbf16>, vector<16x32xf32> -> vector<16x32xf32>
    %cst_66 = arith.constant 2.000000e+00 : f32
    %95 = vector.broadcast %cst_66 : f32 to vector<16x32xf32>
    %96 = arith.mulf %95, %94 : vector<16x32xf32>
    %97 = arith.subf %96, %81 : vector<16x32xf32>
    %98 = arith.truncf %97 : vector<16x32xf32> to vector<16x32xbf16>
    %c2_67 = arith.constant 2 : index
    %c0_68 = arith.constant 0 : index
    %c0_69 = arith.constant 0 : index
    %99 = vector.load %arg9[%c2_67, %c0_68, %c0_69] : memref<3x32x4xbf16, #tpu.memory_space<vmem>>, vector<1x32x4xbf16>
    %100 = vector.shape_cast %99 : vector<1x32x4xbf16> to vector<32x4xbf16>
    %cst_70 = arith.constant dense<0.000000e+00> : vector<16x4xf32>
    %101 = tpu.matmul %98, %100, %cst_70 {dimension_numbers = #tpu.dot_dimension_numbers<[1], [0], [0], [1], [0, 0, 1, 1], [], []>} : vector<16x32xbf16>, vector<32x4xbf16>, vector<16x4xf32> -> vector<16x4xf32>
    %102 = arith.addf %92, %101 : vector<16x4xf32>
    %c0_71 = arith.constant 0 : index
    %c0_72 = arith.constant 0 : index
    %103 = vector.load %arg10[%c0_71, %c0_72] : memref<1x4xf32, #tpu.memory_space<vmem>>, vector<1x4xf32>
    %104 = vector.broadcast %103 : vector<1x4xf32> to vector<16x4xf32>
    %105 = arith.addf %102, %104 : vector<16x4xf32>
    %c0_73 = arith.constant 0 : index
    %c0_74 = arith.constant 0 : index
    %c0_75 = arith.constant 0 : index
    %106 = vector.load %arg11[%c0_73, %c0_74, %c0_75] : memref<1x16x4xf32, #tpu.memory_space<vmem>>, vector<1x16x4xf32>
    %107 = vector.shape_cast %106 : vector<1x16x4xf32> to vector<16x4xf32>
    %108 = vector.shape_cast %105 : vector<16x4xf32> to vector<1x16x4xf32>
    tpu.vector_store %arg11[%c0_73, %c0_74, %c0_75], %108 {strides = array<i32>} : memref<1x16x4xf32, #tpu.memory_space<vmem>>, vector<1x16x4xf32>,
    return
  }
  func.func @transform_0(%arg0: i32) -> (i32, i32, i32) {
    %c0_i32 = arith.constant 0 : i32
    %c0_i32_0 = arith.constant 0 : i32
    %c0_i32_1 = arith.constant 0 : i32
    return %arg0, %c0_i32, %c0_i32_0 : i32, i32, i32
  }
  func.func @transform_1(%arg0: i32) -> (i32, i32, i32) {
    %c0_i32 = arith.constant 0 : i32
    %c0_i32_0 = arith.constant 0 : i32
    %c0_i32_1 = arith.constant 0 : i32
    return %arg0, %c0_i32, %c0_i32_0 : i32, i32, i32
  }
  func.func @transform_2(%arg0: i32) -> (i32, i32, i32) {
    %c0_i32 = arith.constant 0 : i32
    %c0_i32_0 = arith.constant 0 : i32
    %c0_i32_1 = arith.constant 0 : i32
    %c0_i32_2 = arith.constant 0 : i32
    return %c0_i32, %c0_i32_0, %c0_i32_1 : i32, i32, i32
  }
  func.func @transform_3(%arg0: i32) -> (i32, i32) {
    %c0_i32 = arith.constant 0 : i32
    %c0_i32_0 = arith.constant 0 : i32
    %c0_i32_1 = arith.constant 0 : i32
    return %c0_i32, %c0_i32_0 : i32, i32
  }
  func.func @transform_4(%arg0: i32) -> (i32, i32, i32) {
    %c0_i32 = arith.constant 0 : i32
    %c0_i32_0 = arith.constant 0 : i32
    %c0_i32_1 = arith.constant 0 : i32
    %c0_i32_2 = arith.constant 0 : i32
    return %c0_i32, %c0_i32_0, %c0_i32_1 : i32, i32, i32
  }
  func.func @transform_5(%arg0: i32) -> (i32, i32) {
    %c0_i32 = arith.constant 0 : i32
    %c0_i32_0 = arith.constant 0 : i32
    %c0_i32_1 = arith.constant 0 : i32
    return %c0_i32, %c0_i32_0 : i32, i32
  }
  func.func @transform_6(%arg0: i32) -> (i32, i32, i32) {
    %c0_i32 = arith.constant 0 : i32
    %c0_i32_0 = arith.constant 0 : i32
    %c0_i32_1 = arith.constant 0 : i32
    %c0_i32_2 = arith.constant 0 : i32
    return %c0_i32, %c0_i32_0, %c0_i32_1 : i32, i32, i32
  }
  func.func @transform_7(%arg0: i32) -> (i32, i32) {
    %c0_i32 = arith.constant 0 : i32
    %c0_i32_0 = arith.constant 0 : i32
    %c0_i32_1 = arith.constant 0 : i32
    return %c0_i32, %c0_i32_0 : i32, i32
  }
  func.func @transform_8(%arg0: i32) -> (i32, i32, i32) {
    %c0_i32 = arith.constant 0 : i32
    %c0_i32_0 = arith.constant 0 : i32
    %c0_i32_1 = arith.constant 0 : i32
    %c0_i32_2 = arith.constant 0 : i32
    return %c0_i32, %c0_i32_0, %c0_i32_1 : i32, i32, i32
  }
  func.func @transform_9(%arg0: i32) -> (i32, i32) {
    %c0_i32 = arith.constant 0 : i32
    %c0_i32_0 = arith.constant 0 : i32
    %c0_i32_1 = arith.constant 0 : i32
    return %c0_i32, %c0_i32_0 : i32, i32
  }
  func.func @transform_10(%arg0: i32) -> (i32, i32, i32) {
    %c0_i32 = arith.constant 0 : i32
    %c0_i32_0 = arith.constant 0 : i32
    %c0_i32_1 = arith.constant 0 : i32
    return %arg0, %c0_i32, %c0_i32_0 : i32, i32, i32
  }
}

</mosaic_0001>

<bundles_post_ra>
// kernel: tpu_custom_call.1
= control target key start
LH: loop header
LB: loop body
LE: loop exit
PB: predicated region body
PF: predicated region fallthrough
CT: control target
= control target key end

     0   :  { %15 = vsyncpa [#allocation3], 0  ;;  %s2353_s0 = inlined_call_operand.hbm [shape: bf16[2,16,16], index: 0, kind: input, shape index: {}]   ;;  %s2354_s1 = inlined_call_operand.vmem [shape: f32[2,16,8], index: 1, kind: input, shape index: {}]   ;;  %s2355_s2 = inlined_call_operand.vmem [shape: bf16[3,8,32], index: 2, kind: input, shape index: {}]   ;;  %s2356_s3 = inlined_call_operand.vmem [shape: f32[1,32], index: 3, kind: input, shape index: {}]   ;;  %s2357_s4 = inlined_call_operand.vmem [shape: bf16[3,32,32], index: 4, kind: input, shape index: {}]   ;;  %s2358_s5 = inlined_call_operand.vmem [shape: f32[1,32], index: 5, kind: input, shape index: {}]   ;;  %s2359_s6 = inlined_call_operand.vmem [shape: bf16[3,32,32], index: 6, kind: input, shape index: {}]   ;;  %s2360_s7 = inlined_call_operand.vmem [shape: f32[1,32], index: 7, kind: input, shape index: {}]   ;;  %s2361_s8 = inlined_call_operand.vmem [shape: bf16[3,32,4], index: 8, kind: input, shape index: {}]   ;;  %s2362_s9 = inlined_call_operand.vmem [shape: f32[1,4], index: 9, kind: input, shape index: {}]   ;;  %s2363_s10 = inlined_call_operand.vmem [shape: f32[2,16,4], index: 10, kind: output, shape index: {}]  }
   0x1   :  { %17 = vsyncpa [#allocation3 + $0x1], 0  ;;  %s2058_s13 = smov 0   ;;  %s2060_s14 = smov 0  }
   0x2   :  { %s2062_s15 = smov 0   ;;  %s2064_s16 = smov 0  }
   0x3 LB: > { %s2077_s17 = sadd.s32 4294967295, %s1996_s16   ;;  %s2080_s18 = sadd.s32 1, %s1996_s16   ;;  %s1996_s16 = sphi %s2064_s16, %s2370_s16   ;;  %s1992_s15 = sphi %s2062_s15, %s2369_s15   ;;  %s1988_s14 = sphi %s2060_s14, %s2368_s14   ;;  %s1984_s13 = sphi %s2058_s13, %s2367_s13  }
   0x4   : > { %s27_s19 = ssub.s32 %s1996_s16, %s2080_s18  ;;  %s30_s20 = sadd.s32 1, %s1992_s15 }
   0x5   : > { %p28_p0 = scmp.eq.s32.totalorder %s27_s19, 0  ;;  %p37_p1 = scmp.ne.s32.totalorder %s1992_s15, %s1988_s14 }
   0x6   : > { %p38_p2 = scmp.eq.s32.totalorder %s1996_s16, 0  ;;  %p43_p3 = scmp.ne.s32.totalorder %s1988_s14, %s1984_s13 }
   0x7   : > { %s2090_s21 = scalar_select %p28_p0, %s1992_s15, %s30_s20  }
   0x8   : > { %p39_p4 = por %p38_p2, %p37_p1  ;;  %p44_p5 = scmp.eq.s32.totalorder %s2077_s17, 0 }
   0x9   : > { %p1876_p6 = scmp.lt.s32.totalorder %s1996_s16, 2  ;;  %s311_s23 = sand.u32 1, %s1992_s15  }
   0xa   : > { %p2094_p7 = por %p44_p5, %p43_p3  ;;  %s1600_s24 = sshll.u32 %s311_s23, 3 }
   0xb   : > { %s1680_s25 = sshll.u32 %s1996_s16, 7  ;;  %s315_s29 = scalar_lea.vmem [#allocation2], %s1600_s24 }
   0xc   : > { %s2103_s28 = scalar_lea.hbm %s2353_s0, %s1680_s25  ;;  %s322_s30 = sshll.u32 %s315_s29, 4  ;;  %s2105_s30 = int_to_ptr.vmem [resolvable:$true] %s322_s30 }
   0xd   : > { %p2107_p8 = pnand %p1876_p6, %p39_p4  ;;  %s2112_s12 = scalar_lea.sflag [#allocation3], %s311_s23 }
   0xe   : > { %s1932_s13 = scalar_lea.hbm %s2103_s28, 128  ;;  %s1937_s24 = scalar_lea.hbm %s2353_s0, 256 }
   0xf   : > { %p1933_p10 = scmp.ne.s32.totalorder %s2103_s28, %s1932_s13  ;;  %p1934_p11 = pneg %p2107_p8 }
  0x10   : > { %p1938_p0 = scmp.lt.u32.totalorder %s2103_s28, %s2353_s0  ;;  %p1939_p1 = scmp.lt.u32.totalorder %s1937_s24, %s1932_s13 }
  0x11   : > { %p1935_p12 = pnand %p1934_p11, %p1933_p10  ;;  %p1941_p3 = scmp.lt.u32.totalorder %s1932_s13, %s2103_s28 }
  0x12   : > { %p1940_p2 = por %p1939_p1, %p1938_p0 }
  0x13   : > { %p1936_p13 = pneg %p1935_p12 }
  0x14   : > { %p1942_p4 = por %p1941_p3, %p1940_p2 }
  0x16   : > { %p1943_p5 = pnand %p1942_p4, %p1936_p13 }
  0x18   : > { %1946 = shalt.err (!%p1943_p5)
}
  0x19   : > { %s1947_s23 = scalar_lea.vmem %s2105_s30, 128  ;;  %s1998_s27 = smov [#allocation2]  }
  0x1a   : > { %p1948_p6 = scmp.ne.s32.totalorder %s2105_s30, %s1947_s23  ;;  %s1952_s29 = sshll.u32 %s1998_s27, 4  ;;  %s1953_s29 = int_to_ptr.vmem [resolvable:$false] %s1952_s29 }
  0x1b   : > { %s1954_s19 = scalar_lea.vmem %s1953_s29, 256  ;;  %p1955_p9 = scmp.lt.s32.totalorder %s2105_s30, %s1953_s29 }
  0x1c   : > { %p1950_p10 = pnand %p1948_p6, %p1934_p11  ;;  %p1956_p0 = scmp.lt.s32.totalorder %s1954_s19, %s1947_s23 }
  0x1e   : > { %p1951_p12 = pneg %p1950_p10  ;;  %p1957_p1 = por %p1956_p0, %p1955_p9 }
  0x20   : > { %p1958_p2 = pnand %p1957_p1, %p1951_p12 }
  0x22   : > { %1961 = shalt.err (!%p1958_p2)
}
  0x23   : > { %s1999_s13 = smov 64   ;;  %s2000_s20 = smov 4  }
  0x24   : > { %1875 = dma.hbm_to_vmem [thread:$0]  (!%p2107_p8), %s2103_s28, 128, %s2105_s30, %s2112_s12, %s1999_s13, %s1999_s13, %s2000_s20  }
  0x25   : > { %p338_p11 = scmp.lt.s32.totalorder %s1996_s16, 3  ;;  %p2366_p13 = scmp.ge.s32.totalorder %s1996_s16, 1 }
  0x27   : > { %p339_p3 = pnand %p2366_p13, %p338_p11 }
  0x28   : > { %s344_s24 = sand.u32 (!%p339_p3), 1, %s1988_s14  }
  0x29   : > { %342 = sbr.rel (%p339_p3) target bundleno = 2730 (0xaaa), region = 60  ;;  %s1604_s25 = sshll.u32 (!%p339_p3), %s344_s24, 3 }
  0x2a   : > { %s345_s26 = scalar_lea.sflag (!%p339_p3), [#allocation3], %s344_s24  ;;  %s348_s23 = scalar_lea.vmem (!%p339_p3), [#allocation2], %s1604_s25 }
  0x30   : > { %1979 = dma.done.wait (%p2094_p7), %s345_s26, 128  }
  0x31   : > { %1981 = vsyncadd (%p2094_p7), %s345_s26, 4294967168  ;;  %p390_p9 = scmp.lt.s32.totalorder %s2077_s17, 1  ;;  %v2001_v0 = vmov 0.0   ;;  %vm2002_vm0 = vmmov 0   ;;  %v2164_v4 = vld [vmem:[%s348_s23] sm:$0xff]   ;;  %vm412_vm1 = vcmask 130048  }
  0x32   : > { %1732 = vmatprep.subr.bf16.mxu0 %v2001_v0  ;;  %1734 = vmatprep.mubr.msk.bf16.mxu0 %vm2002_vm0, %v2001_v0  ;;  %v1611_v5 = vld [vmem:[%s2355_s2 + $0x4] sm:$0xf]  ;;  %vm464_vm2 = vcmask 1043456   ;;  %v406_v7 = vld [vmem:[%s2355_s2] sm:$0xf]  ;;  %vm460_vm3 = vcmask 64512  }
  0x33   : > { %s2372_s17 = smov (!%p390_p9, %s2077_s17), 1  ;;  %1738 = vmatprep.subr.bf16.mxu1 %v2001_v0  ;;  %1740 = vmatprep.mubr.msk.bf16.mxu1 %vm2002_vm0, %v2001_v0  ;;  %v466_v6 = vsel %vm464_vm2, %v1611_v5, 0  ;;  %v513_v8 = vsel %vm464_vm2, %v406_v7, 0  ;;  %v1615_v18 = vld [vmem:[%s2355_s2 + $0x8] sm:$0xf]  ;;  %v1916_v35 = vld [vmem:[%s2357_s4 + $0x10] sm:$0xff]  }
  0x34   : > { %s1681_s16 = sshll.u32 %s2372_s17, 4  ;;  %1739 = vmatpush3.bf16.msra.mxu1 %v466_v6  ;;  %v608_v19 = vsel %vm464_vm2, %v1615_v18, 0  ;;  %v1617_v37 = vld [vmem:[%s2356_s3] ss:$0 sm:$0xff]  ;;  %v1915_v49 = vld [vmem:[%s2357_s4 + $0x8] sm:$0xff]   ;;  %vm728_vm4 = vcmask 261120  }
  0x35   : > { %s394_s30 = scalar_lea.vmem %s2354_s1, %s1681_s16  ;;  %1750 = vmatprep.subr.bf16.mxu1 %v2001_v0  ;;  %v1914_v48 = vld [vmem:[%s2357_s4] sm:$0xff]   ;;  %v1917_v50 = vld [vmem:[%s2357_s4 + $0x18] sm:$0xff]   ;;  %v1919_v61 = vld [vmem:[%s2357_s4 + $0x28] sm:$0xff]   ;;  %s399_s23 = scalar_lea.vmem %s2363_s10, %s1681_s16  ;;  %vm1515_vm5 = vcmask 31744  }
  0x36   : > { %v403_v1 = vld [vmem:[%s394_s30] sm:$0xff]  ;;  %v404_v2 = vld [vmem:[%s394_s30 + $0x8] sm:$0xff] }
  0x37   : > { %v405_v3 = vpack.c.bf16 %v404_v2, %v403_v1  ;;  %v1918_v60 = vld [vmem:[%s2357_s4 + $0x20] sm:$0xff]  }
  0x39   : > { %1733 = vmatpush3.bf16.msra.mxu0 %v405_v3 }
  0x3a   : > { %1744 = vmatprep.subr.bf16.mxu0 %v2001_v0 }
  0x3c   : > { %1735 = vmatmul.mubr.msk.bf16.vlgmr.msra.gmra.mrb[0].mxu0 %vm412_vm1, %v2164_v4 }
  0x3d   : > { %1746 = vmatprep.mubr.msk.bf16.mxu0 %vm2002_vm0, %v2001_v0  ;;  %1745 = vmatpush3.bf16.msra.mxu0 %v513_v8 }
  0x3e   : > { %1756 = vmatprep.subr.bf16.mxu0 %v2001_v0 }
  0x44   : > { %1747 = vmatmul.mubr.msk.bf16.vlgmr.msra.gmra.mrb[4].mxu0 %vm460_vm3, %v405_v3 }
  0x45   : > { %1758 = vmatprep.mubr.msk.bf16.mxu0 %vm2002_vm0, %v2001_v0  ;;  %1757 = vmatpush3.bf16.msra.mxu0 %v608_v19 }
  0x46   : > { %1768 = vmatprep.subr.bf16.mxu0 %v2001_v0 }
 0x10f   : > { %v450_v9 = vpop.f32.mrb[0].mxu0 }
 0x110   : > { %v1736_v10 = vpop.f32.mrb[1].mxu0 }
 0x111   : > { %v453_v11 = vpop.f32.mrb[2].mxu0 }
 0x112   : > { %v457_v12 = vpack.c.bf16 %v453_v11, %v450_v9  ;;  %v1737_v13 = vpop.f32.mrb[3].mxu0 }
 0x114   : > { %1741 = vmatmul.mubr.msk.bf16.vlgmr.msra.gmra.mrb[0].mxu1 %vm460_vm3, %v457_v12 }
 0x115   : > { %1751 = vmatpush3.bf16.msra.mxu1 %v457_v12  ;;  %1752 = vmatprep.mubr.msk.bf16.mxu1 %vm2002_vm0, %v2001_v0 }
 0x116   : > { %1762 = vmatprep.subr.bf16.mxu1 %v2001_v0 }
 0x117   : > { %v549_v14 = vpop.f32.mrb[4].mxu0 }
 0x118   : > { %v1748_v15 = vpop.f32.mrb[5].mxu0 }
 0x119   : > { %v552_v16 = vpop.f32.mrb[6].mxu0  ;;  %v1922_v15 = vld [vmem:[%s2359_s6 + $0x10] sm:$0xff]  }
 0x11a   : > { %v1749_v17 = vpop.f32.mrb[7].mxu0 }
 0x11b   : > { %v1637_v17 = vld [vmem:[%s2358_s5] ss:$0 sm:$0xff] }
 0x11c   : > { %1753 = vmatmul.mubr.msk.bf16.vlgmr.msra.gmra.mrb[4].mxu1 %vm412_vm1, %v2164_v4 }
 0x11d   : > { %1764 = vmatprep.mubr.msk.bf16.mxu1 %vm2002_vm0, %v2001_v0 }
 0x1e7   : > { %v502_v20 = vpop.f32.mrb[0].mxu1 }
 0x1e8   : > { %v550_v21 = vadd.f32 %v549_v14, %v502_v20  ;;  %v1742_v22 = vpop.f32.mrb[1].mxu1 }
 0x1e9   : > { %v505_v23 = vpop.f32.mrb[2].mxu1 }
 0x1ea   : > { %v553_v24 = vadd.f32 %v552_v16, %v505_v23  ;;  %v1743_v25 = vpop.f32.mrb[3].mxu1 }
 0x1ef   : > { %v590_v26 = vpop.f32.mrb[4].mxu1 }
 0x1f0   : > { %v597_v27 = vmul.f32 2.0, %v590_v26  ;;  %v1754_v28 = vpop.f32.mrb[5].mxu1 }
 0x1f1   : > { %v593_v29 = vpop.f32.mrb[6].mxu1  ;;  %v1920_v28 = vld [vmem:[%s2359_s6] sm:$0xff]  }
 0x1f2   : > { %v598_v30 = vmul.f32 2.0, %v593_v29  ;;  %v1755_v31 = vpop.f32.mrb[7].mxu1  ;;  %v599_v32 = vsub.f32 %v597_v27, %v403_v1  ;;  %v1921_v29 = vld [vmem:[%s2359_s6 + $0x8] sm:$0xff]  }
 0x1f4   : > { %v600_v33 = vsub.f32 %v598_v30, %v404_v2  ;;  %v1923_v30 = vld [vmem:[%s2359_s6 + $0x18] sm:$0xff]  }
 0x1f6   : > { %v601_v34 = vpack.c.bf16 %v600_v33, %v599_v32 }
 0x1f8   : > { %1759 = vmatmul.mubr.msk.bf16.vlgmr.msra.gmra.mrb[8].mxu0 %vm460_vm3, %v601_v34 }
 0x1f9   : > { %1772 = vmatprep.mubr.msk.bf16.mxu0 %vm2002_vm0, %v2001_v0  ;;  %1769 = vmatpush3.bf16.msra.mxu0 %v1916_v35 }
 0x1fa   : > { %1770 = vmatprep.subr.bf16.mxu0 %v2001_v0 }
 0x1fd   : > { %1771 = vmatpush3.bf16.msra.mxu0 %v1917_v50 }
 0x1fe   : > { %1784 = vmatprep.subr.bf16.mxu0 %v2001_v0 }
 0x2cb   : > { %v644_v36 = vpop.f32.mrb[8].mxu0 }
 0x2cc   : > { %v651_v38 = vadd.f32 %v644_v36, %v550_v21  ;;  %v1760_v39 = vpop.f32.mrb[9].mxu0 }
 0x2cd   : > { %v647_v40 = vpop.f32.mrb[10].mxu0 }
 0x2ce   : > { %v660_v41 = vadd.f32 %v1617_v37, %v651_v38  ;;  %v652_v42 = vadd.f32 %v647_v40, %v553_v24  ;;  %v1761_v43 = vpop.f32.mrb[11].mxu0  ;;  %v1924_v40 = vld [vmem:[%s2359_s6 + $0x20] sm:$0xff]  }
 0x2d0   : > { %v661_v44 = vadd.f32 %v1617_v37, %v652_v42  ;;  %v662_v45 = vmax.f32 %v660_v41, 0.0  ;;  %v1925_v41 = vld [vmem:[%s2359_s6 + $0x28] sm:$0xff]  }
 0x2d2   : > { %v663_v46 = vmax.f32 %v661_v44, 0.0 }
 0x2d4   : > { %v664_v47 = vpack.c.bf16 %v663_v46, %v662_v45 }
 0x2d6   : > { %1763 = vmatpush3.bf16.msra.mxu1 %v664_v47 }
 0x2d7   : > { %1776 = vmatprep.subr.bf16.mxu1 %v2001_v0 }
 0x2d9   : > { %1765 = vmatmul.mubr.msk.bf16.vlgmr.msra.gmra.mrb[8].mxu1 %vm412_vm1, %v2164_v4 }
 0x2da   : > { %1777 = vmatpush3.bf16.msra.mxu1 %v1914_v48  ;;  %1780 = vmatprep.mubr.msk.bf16.mxu1 %vm2002_vm0, %v2001_v0 }
 0x2db   : > { %1778 = vmatprep.subr.bf16.mxu1 %v2001_v0 }
 0x2de   : > { %1779 = vmatpush3.bf16.msra.mxu1 %v1915_v49 }
 0x2df   : > { %1790 = vmatprep.subr.bf16.mxu1 %v2001_v0 }
 0x2e1   : > { %1781 = vmatmul.mubr.msk.bf16.vlgmr.msra.gmra.mrb[12].mxu1 %vm728_vm4, %v664_v47 }
 0x2e2   : > { %1794 = vmatprep.mubr.msk.bf16.mxu1 %vm2002_vm0, %v2001_v0  ;;  %1791 = vmatpush3.bf16.msra.mxu1 %v1918_v60 }
 0x2e3   : > { %1792 = vmatprep.subr.bf16.mxu1 %v2001_v0 }
 0x2e6   : > { %1793 = vmatpush3.bf16.msra.mxu1 %v1919_v61 }
 0x2e7   : > { %1804 = vmatprep.subr.bf16.mxu1 %v2001_v0 }
 0x3ac   : > { %v703_v51 = vpop.f32.mrb[8].mxu1 }
 0x3ad   : > { %v1766_v52 = vpop.f32.mrb[9].mxu1 }
 0x3ae   : > { %v706_v53 = vpop.f32.mrb[10].mxu1 }
 0x3af   : > { %v710_v54 = vpack.c.bf16 %v706_v53, %v703_v51  ;;  %v1767_v55 = vpop.f32.mrb[11].mxu1 }
 0x3b1   : > { %1773 = vmatmul.mubr.msk.bf16.vlgmr.msra.gmra.mrb[12].mxu0 %vm728_vm4, %v710_v54 }
 0x3b2   : > { %1785 = vmatpush3.bf16.msra.mxu0 %v710_v54  ;;  %1786 = vmatprep.mubr.msk.bf16.mxu0 %vm2002_vm0, %v2001_v0 }
 0x3b3   : > { %1798 = vmatprep.subr.bf16.mxu0 %v2001_v0 }
 0x3b4   : > { %v822_v56 = vpop.f32.mrb[12].mxu1 }
 0x3b5   : > { %v1782_v57 = vpop.f32.mrb[13].mxu1 }
 0x3b6   : > { %v825_v58 = vpop.f32.mrb[14].mxu1  ;;  %v1928_v57 = vld [vmem:[%s2361_s8 + $0x10] sm:$0xff]  }
 0x3b7   : > { %v1783_v59 = vpop.f32.mrb[15].mxu1 }
 0x3b8   : > { %v1657_v59 = vld [vmem:[%s2360_s7] ss:$0 sm:$0xff] }
 0x3b9   : > { %1787 = vmatmul.mubr.msk.bf16.vlgmr.msra.gmra.mrb[16].mxu0 %vm412_vm1, %v2164_v4 }
 0x3ba   : > { %1800 = vmatprep.mubr.msk.bf16.mxu0 %vm2002_vm0, %v2001_v0 }
 0x484   : > { %v766_v62 = vpop.f32.mrb[12].mxu0 }
 0x485   : > { %v823_v63 = vadd.f32 %v822_v56, %v766_v62  ;;  %v1774_v1 = vpop.f32.mrb[13].mxu0 }
 0x486   : > { %v769_v2 = vpop.f32.mrb[14].mxu0 }
 0x487   : > { %v826_v3 = vadd.f32 %v825_v58, %v769_v2  ;;  %v1775_v5 = vpop.f32.mrb[15].mxu0 }
 0x48c   : > { %v863_v6 = vpop.f32.mrb[16].mxu0 }
 0x48d   : > { %v870_v7 = vmul.f32 2.0, %v863_v6  ;;  %v1788_v8 = vpop.f32.mrb[17].mxu0 }
 0x48e   : > { %v866_v9 = vpop.f32.mrb[18].mxu0  ;;  %v1926_v8 = vld [vmem:[%s2361_s8] sm:$0xff]  }
 0x48f   : > { %v871_v10 = vmul.f32 2.0, %v866_v9  ;;  %v1789_v11 = vpop.f32.mrb[19].mxu0  ;;  %v872_v12 = vsub.f32 %v870_v7, %v662_v45  ;;  %v1927_v9 = vld [vmem:[%s2361_s8 + $0x8] sm:$0xff]  }
 0x491   : > { %v873_v13 = vsub.f32 %v871_v10, %v663_v46  ;;  %v1929_v10 = vld [vmem:[%s2361_s8 + $0x18] sm:$0xff]  }
 0x493   : > { %v874_v14 = vpack.c.bf16 %v873_v13, %v872_v12 }
 0x495   : > { %1795 = vmatmul.mubr.msk.bf16.vlgmr.msra.gmra.mrb[16].mxu1 %vm728_vm4, %v874_v14 }
 0x496   : > { %1808 = vmatprep.mubr.msk.bf16.mxu1 %vm2002_vm0, %v2001_v0  ;;  %1805 = vmatpush3.bf16.msra.mxu1 %v1922_v15 }
 0x497   : > { %1806 = vmatprep.subr.bf16.mxu1 %v2001_v0 }
 0x49a   : > { %1807 = vmatpush3.bf16.msra.mxu1 %v1923_v30 }
 0x49b   : > { %1820 = vmatprep.subr.bf16.mxu1 %v2001_v0 }
 0x568   : > { %v929_v16 = vpop.f32.mrb[16].mxu1 }
 0x569   : > { %v936_v18 = vadd.f32 %v929_v16, %v823_v63  ;;  %v1796_v19 = vpop.f32.mrb[17].mxu1 }
 0x56a   : > { %v932_v20 = vpop.f32.mrb[18].mxu1 }
 0x56b   : > { %v945_v21 = vadd.f32 %v1637_v17, %v936_v18  ;;  %v937_v22 = vadd.f32 %v932_v20, %v826_v3  ;;  %v1797_v23 = vpop.f32.mrb[19].mxu1  ;;  %v1930_v20 = vld [vmem:[%s2361_s8 + $0x20] sm:$0xff]  }
 0x56d   : > { %v946_v24 = vadd.f32 %v1637_v17, %v937_v22  ;;  %v947_v25 = vmax.f32 %v945_v21, 0.0  ;;  %v1931_v21 = vld [vmem:[%s2361_s8 + $0x28] sm:$0xff]  }
 0x56f   : > { %v948_v26 = vmax.f32 %v946_v24, 0.0 }
 0x571   : > { %v949_v27 = vpack.c.bf16 %v948_v26, %v947_v25 }
 0x573   : > { %1799 = vmatpush3.bf16.msra.mxu0 %v949_v27 }
 0x574   : > { %1812 = vmatprep.subr.bf16.mxu0 %v2001_v0 }
 0x576   : > { %1801 = vmatmul.mubr.msk.bf16.vlgmr.msra.gmra.mrb[20].mxu0 %vm412_vm1, %v2164_v4 }
 0x577   : > { %1813 = vmatpush3.bf16.msra.mxu0 %v1920_v28  ;;  %1816 = vmatprep.mubr.msk.bf16.mxu0 %vm2002_vm0, %v2001_v0 }
 0x578   : > { %1814 = vmatprep.subr.bf16.mxu0 %v2001_v0 }
 0x57b   : > { %1815 = vmatpush3.bf16.msra.mxu0 %v1921_v29 }
 0x57c   : > { %1826 = vmatprep.subr.bf16.mxu0 %v2001_v0 }
 0x57e   : > { %1817 = vmatmul.mubr.msk.bf16.vlgmr.msra.gmra.mrb[24].mxu0 %vm728_vm4, %v949_v27 }
 0x57f   : > { %1830 = vmatprep.mubr.msk.bf16.mxu0 %vm2002_vm0, %v2001_v0  ;;  %1827 = vmatpush3.bf16.msra.mxu0 %v1924_v40 }
 0x580   : > { %1828 = vmatprep.subr.bf16.mxu0 %v2001_v0 }
 0x583   : > { %1829 = vmatpush3.bf16.msra.mxu0 %v1925_v41 }
 0x584   : > { %1840 = vmatprep.subr.bf16.mxu0 %v2001_v0 }
 0x649   : > { %v988_v31 = vpop.f32.mrb[20].mxu0 }
 0x64a   : > { %v1802_v32 = vpop.f32.mrb[21].mxu0 }
 0x64b   : > { %v991_v33 = vpop.f32.mrb[22].mxu0 }
 0x64c   : > { %v995_v34 = vpack.c.bf16 %v991_v33, %v988_v31  ;;  %v1803_v35 = vpop.f32.mrb[23].mxu0 }
 0x64e   : > { %1809 = vmatmul.mubr.msk.bf16.vlgmr.msra.gmra.mrb[20].mxu1 %vm728_vm4, %v995_v34 }
 0x64f   : > { %1821 = vmatpush3.bf16.msra.mxu1 %v995_v34  ;;  %1822 = vmatprep.mubr.msk.bf16.mxu1 %vm2002_vm0, %v2001_v0 }
 0x650   : > { %1834 = vmatprep.subr.bf16.mxu1 %v2001_v0 }
 0x651   : > { %v1106_v36 = vpop.f32.mrb[24].mxu0 }
 0x652   : > { %v1818_v37 = vpop.f32.mrb[25].mxu0 }
 0x653   : > { %v1109_v38 = vpop.f32.mrb[26].mxu0 }
 0x654   : > { %v1819_v39 = vpop.f32.mrb[27].mxu0 }
 0x656   : > { %1823 = vmatmul.mubr.msk.bf16.vlgmr.msra.gmra.mrb[24].mxu1 %vm412_vm1, %v2164_v4 }
 0x657   : > { %1836 = vmatprep.mubr.msk.bf16.mxu1 %vm2002_vm0, %v2001_v0 }
 0x721   : > { %v1050_v42 = vpop.f32.mrb[20].mxu1 }
 0x722   : > { %v1107_v43 = vadd.f32 %v1106_v36, %v1050_v42  ;;  %v1810_v44 = vpop.f32.mrb[21].mxu1  ;;  %v1677_v36 = vld [vmem:[%s2362_s9] ss:$0 sm:$0xff] }
 0x723   : > { %v1053_v45 = vpop.f32.mrb[22].mxu1 }
 0x724   : > { %v1110_v46 = vadd.f32 %v1109_v38, %v1053_v45  ;;  %v1811_v47 = vpop.f32.mrb[23].mxu1 }
 0x729   : > { %v1147_v48 = vpop.f32.mrb[24].mxu1 }
 0x72a   : > { %v1154_v49 = vmul.f32 2.0, %v1147_v48  ;;  %v1824_v50 = vpop.f32.mrb[25].mxu1 }
 0x72b   : > { %v1150_v51 = vpop.f32.mrb[26].mxu1 }
 0x72c   : > { %v1155_v52 = vmul.f32 2.0, %v1150_v51  ;;  %v1825_v53 = vpop.f32.mrb[27].mxu1  ;;  %v1156_v54 = vsub.f32 %v1154_v49, %v947_v25 }
 0x72e   : > { %v1157_v55 = vsub.f32 %v1155_v52, %v948_v26 }
 0x730   : > { %v1158_v56 = vpack.c.bf16 %v1157_v55, %v1156_v54 }
 0x732   : > { %1831 = vmatmul.mubr.msk.bf16.vlgmr.msra.gmra.mrb[28].mxu0 %vm728_vm4, %v1158_v56 }
 0x733   : > { %1844 = vmatprep.mubr.msk.bf16.mxu0 %vm2002_vm0, %v2001_v0  ;;  %1841 = vmatpush3.bf16.msra.mxu0 %v1928_v57 }
 0x734   : > { %1842 = vmatprep.subr.bf16.mxu0 %v2001_v0 }
 0x737   : > { %1843 = vmatpush3.bf16.msra.mxu0 %v1929_v10 }
 0x738   : > { %1856 = vmatprep.subr.bf16.mxu0 %v2001_v0 }
 0x805   : > { %v1213_v58 = vpop.f32.mrb[28].mxu0 }
 0x806   : > { %v1220_v60 = vadd.f32 %v1213_v58, %v1107_v43  ;;  %v1832_v61 = vpop.f32.mrb[29].mxu0 }
 0x807   : > { %v1216_v62 = vpop.f32.mrb[30].mxu0 }
 0x808   : > { %v1229_v63 = vadd.f32 %v1657_v59, %v1220_v60  ;;  %v1221_v1 = vadd.f32 %v1216_v62, %v1110_v46  ;;  %v1833_v2 = vpop.f32.mrb[31].mxu0 }
 0x80a   : > { %v1230_v3 = vadd.f32 %v1657_v59, %v1221_v1  ;;  %v1231_v5 = vmax.f32 %v1229_v63, 0.0 }
 0x80c   : > { %v1232_v6 = vmax.f32 %v1230_v3, 0.0 }
 0x80e   : > { %v1233_v7 = vpack.c.bf16 %v1232_v6, %v1231_v5 }
 0x810   : > { %1835 = vmatpush3.bf16.msra.mxu1 %v1233_v7 }
 0x811   : > { %1848 = vmatprep.subr.bf16.mxu1 %v2001_v0 }
 0x813   : > { %1837 = vmatmul.mubr.msk.bf16.vlgmr.msra.gmra.mrb[28].mxu1 %vm412_vm1, %v2164_v4 }
 0x814   : > { %1849 = vmatpush3.bf16.msra.mxu1 %v1926_v8  ;;  %1852 = vmatprep.mubr.msk.bf16.mxu1 %vm2002_vm0, %v2001_v0 }
 0x815   : > { %1850 = vmatprep.subr.bf16.mxu1 %v2001_v0 }
 0x818   : > { %1851 = vmatpush3.bf16.msra.mxu1 %v1927_v9 }
 0x819   : > { %1862 = vmatprep.subr.bf16.mxu1 %v2001_v0 }
 0x81b   : > { %1853 = vmatmul.mubr.msk.bf16.vlgmr.msra.gmra.mrb[32].mxu1 %vm728_vm4, %v1233_v7 }
 0x81c   : > { %1866 = vmatprep.mubr.msk.bf16.mxu1 %vm2002_vm0, %v2001_v0  ;;  %1863 = vmatpush3.bf16.msra.mxu1 %v1930_v20 }
 0x81d   : > { %1864 = vmatprep.subr.bf16.mxu1 %v2001_v0 }
 0x820   : > { %1865 = vmatpush3.bf16.msra.mxu1 %v1931_v21 }
 0x8e6   : > { %v1272_v11 = vpop.f32.mrb[28].mxu1 }
 0x8e7   : > { %v1838_v12 = vpop.f32.mrb[29].mxu1 }
 0x8e8   : > { %v1275_v13 = vpop.f32.mrb[30].mxu1 }
 0x8e9   : > { %v1279_v14 = vpack.c.bf16 %v1275_v13, %v1272_v11  ;;  %v1839_v15 = vpop.f32.mrb[31].mxu1 }
 0x8eb   : > { %1845 = vmatmul.mubr.msk.bf16.vlgmr.msra.gmra.mrb[32].mxu0 %vm728_vm4, %v1279_v14 }
 0x8ec   : > { %1857 = vmatpush3.bf16.msra.mxu0 %v1279_v14  ;;  %1858 = vmatprep.mubr.msk.bf16.mxu0 %vm2002_vm0, %v2001_v0 }
 0x8ee   : > { %v1390_v16 = vpop.f32.mrb[32].mxu1 }
 0x8ef   : > { %v1854_v17 = vpop.f32.mrb[33].mxu1 }
 0x8f0   : > { %v1393_v18 = vpop.f32.mrb[34].mxu1 }
 0x8f1   : > { %v1855_v19 = vpop.f32.mrb[35].mxu1 }
 0x8f3   : > { %1859 = vmatmul.mubr.msk.bf16.vlgmr.msra.gmra.mrb[36].mxu0 %vm412_vm1, %v2164_v4 }
 0x9be   : > { %v1334_v22 = vpop.f32.mrb[32].mxu0 }
 0x9bf   : > { %v1391_v23 = vadd.f32 %v1390_v16, %v1334_v22  ;;  %v1846_v24 = vpop.f32.mrb[33].mxu0 }
 0x9c0   : > { %v1337_v25 = vpop.f32.mrb[34].mxu0 }
 0x9c1   : > { %v1394_v26 = vadd.f32 %v1393_v18, %v1337_v25  ;;  %v1847_v27 = vpop.f32.mrb[35].mxu0 }
 0x9c6   : > { %v1431_v4 = vpop.f32.mrb[36].mxu0 }
 0x9c7   : > { %v1438_v28 = vmul.f32 2.0, %v1431_v4  ;;  %v1860_v29 = vpop.f32.mrb[37].mxu0 }
 0x9c8   : > { %v1434_v30 = vpop.f32.mrb[38].mxu0 }
 0x9c9   : > { %v1439_v31 = vmul.f32 2.0, %v1434_v30  ;;  %v1861_v32 = vpop.f32.mrb[39].mxu0  ;;  %v1440_v33 = vsub.f32 %v1438_v28, %v1231_v5 }
 0x9cb   : > { %v1441_v0 = vsub.f32 %v1439_v31, %v1232_v6 }
 0x9cd   : > { %v1442_v34 = vpack.c.bf16 %v1441_v0, %v1440_v33 }
 0x9cf   : > { %1867 = vmatmul.mubr.msk.bf16.vlgmr.msra.gmra.mrb[36].mxu1 %vm728_vm4, %v1442_v34 }
 0xaa2   : > { %v1497_v35 = vpop.f32.mrb[36].mxu1 }
 0xaa3   : > { %v1504_v37 = vadd.f32 %v1497_v35, %v1391_v23  ;;  %v1868_v38 = vpop.f32.mrb[37].mxu1 }
 0xaa4   : > { %v1500_v39 = vpop.f32.mrb[38].mxu1 }
 0xaa5   : > { %v1513_v40 = vadd.f32 %v1677_v36, %v1504_v37  ;;  %v1505_v41 = vadd.f32 %v1500_v39, %v1394_v26  ;;  %v1869_v42 = vpop.f32.mrb[39].mxu1 }
 0xaa7   : > { %1516 = vst.msk [vmem:[%s399_s23] sm:$0xff] %vm1515_vm5, %v1513_v40  ;;  %v1514_v43 = vadd.f32 %v1677_v36, %v1505_v41 }
 0xaa9   : > { %1517 = vst.msk [vmem:[%s399_s23 + $0x8] sm:$0xff] %vm1515_vm5, %v1514_v43 }
 0xaaa PF: > { %p20_p7 = scmp.ge.s32.totalorder %s2080_s18, 4   ;;  %s2367_s13 = smov %s1988_s14 }
 0xaab   : > { %s2368_s14 = smov %s1992_s15  ;;  %s2369_s15 = smov %s2090_s21 }
 0xaac   : > { %s2370_s16 = smov %s2080_s18  ;;  %22 = sbr.rel (!%p20_p7) target bundleno = 3 (0x3), region = 111 }
 0xab3   :  { %1539 = vsyncpa [#allocation3], 1 }
 0xab4   :  { %1541 = vsyncpa [#allocation3 + $0x1], 1 }

</bundles_post_ra>
